<compile_context>
chip_gen: v7x
topology: tpu7x:2x2x1
jax: 0.10.0
libtpu: 0.0.40
codegen_flags: <defaults>
</compile_context>

<pallas_src>
import functools
from types import SimpleNamespace

import numpy as np
import jax
import jax.numpy as jnp
from jax import lax
from jax.experimental import pallas as pl
from jax.experimental.pallas import tpu as pltpu


LANE = 128


def _round_up(x, m):
    return (x + m - 1) // m * m


# ----------------------------------------------------------------------------
# Fused Pallas kernel: encoder (tanh(x@We+be)) + packed heads + probabilities
# ----------------------------------------------------------------------------
def _ffnn_fused_kernel(emb_ref, enc_w_ref, enc_b_ref, head_w_ref, head_b_ref,
                       hid_ref, logit_ref, prob_ref, *, entity_size):
    # ---- encoder: hidden = tanh(emb @ enc_w + enc_b) --------------------- MXU
    h = jnp.dot(emb_ref[...], enc_w_ref[...],
                preferred_element_type=jnp.float32)
    h = jnp.tanh(h + enc_b_ref[...])
    hid_ref[...] = h.astype(hid_ref.dtype)

    # ---- packed heads: cols [0:E) = aspect logits, [E:E+3) = opinion ----- MXU
    logits = jnp.dot(h.astype(head_w_ref.dtype), head_w_ref[...],
                     preferred_element_type=jnp.float32) + head_b_ref[...]
    logit_ref[...] = logits.astype(logit_ref.dtype)

    # ---- probabilities: sigmoid (aspect) + masked softmax (opinion) -- VPU/EUP
    col = lax.broadcasted_iota(jnp.int32, logits.shape, 1)
    op_mask = (col >= entity_size) & (col < entity_size + 3)

    masked = jnp.where(op_mask, logits, jnp.float32(-1e30))
    m = jnp.max(masked, axis=-1, keepdims=True)
    e = jnp.where(op_mask, jnp.exp(logits - m), jnp.float32(0.0))
    denom = jnp.sum(e, axis=-1, keepdims=True)
    softmax = e * pl.reciprocal(denom, approx=True)

    sigmoid = pl.reciprocal(1.0 + jnp.exp(-logits), approx=True)

    prob_ref[...] = jnp.where(op_mask, softmax, sigmoid).astype(prob_ref.dtype)


@functools.partial(jax.jit, static_argnames=("entity_size",))
def ffnn_forward_fused(params, input_ids, attention_mask, token_type_ids,
                       entity_size):
    """Mirrors FFNN.forward (both heads at once) with one fused Pallas kernel.

    Returns (hidden[B,S,H], aspect_logits[B,E], opinion_logits[B,S,3],
             aspect_probs[B,E], opinion_probs[B,S,3]).
    """
    E = entity_size
    B, S = input_ids.shape
    H = params["embed"].shape[1]

    # TODO(synk): embedding lookup stands in for the DebertaV2 backbone input
    # embeddings; the gather stays in XLA (data-dependent, tiny).
    emb = params["embed"][input_ids] + params["type_embed"][token_type_ids]
    emb = emb * attention_mask[..., None].astype(emb.dtype)

    M = B * S
    KP = _round_up(H, LANE)                       # lane-padded hidden dim
    NP = _round_up(E + 3, LANE)                   # lane-padded packed-head dim
    M_pad = _round_up(M, 8)
    tm = min(256, M_pad)                          # row tile (multiple of 8)
    M_pad = _round_up(M_pad, tm)

    emb_pad = jnp.zeros((M_pad, KP), jnp.bfloat16)
    emb_pad = emb_pad.at[:M, :H].set(emb.reshape(M, H).astype(jnp.bfloat16))

    kernel = functools.partial(_ffnn_fused_kernel, entity_size=E)
    hid_pad, logit_pad, prob_pad = pl.pallas_call(
        kernel,
        out_shape=(
            jax.ShapeDtypeStruct((M_pad, KP), jnp.float32),   # hidden
            jax.ShapeDtypeStruct((M_pad, NP), jnp.float32),   # packed logits
            jax.ShapeDtypeStruct((M_pad, NP), jnp.float32),   # packed probs
        ),
        grid=(M_pad // tm,),
        in_specs=[
            pl.BlockSpec((tm, KP), lambda i: (i, 0)),   # emb tile
            pl.BlockSpec((KP, KP), lambda i: (0, 0)),   # enc_w (resident)
            pl.BlockSpec((1, KP), lambda i: (0, 0)),    # enc_b
            pl.BlockSpec((KP, NP), lambda i: (0, 0)),   # packed head weights
            pl.BlockSpec((1, NP), lambda i: (0, 0)),    # packed head bias
        ],
        out_specs=(
            pl.BlockSpec((tm, KP), lambda i: (i, 0)),
            pl.BlockSpec((tm, NP), lambda i: (i, 0)),
            pl.BlockSpec((tm, NP), lambda i: (i, 0)),
        ),
        compiler_params=pltpu.CompilerParams(
            dimension_semantics=("parallel",)),
    )(emb_pad, params["enc_w"], params["enc_b"],
      params["head_w"], params["head_b"])

    hidden = hid_pad[:M, :H].reshape(B, S, H)
    aspect_logits = logit_pad[:M, :E].reshape(B, S, E)[:, 0, :]     # CLS token
    opinion_logits = logit_pad[:M, E:E + 3].reshape(B, S, 3)
    aspect_probs = prob_pad[:M, :E].reshape(B, S, E)[:, 0, :]
    opinion_probs = prob_pad[:M, E:E + 3].reshape(B, S, 3)
    return hidden, aspect_logits, opinion_logits, aspect_probs, opinion_probs


# ----------------------------------------------------------------------------
# Parameters (deterministic init, pre-padded lane-dense bf16 weights)
# ----------------------------------------------------------------------------
def init_ffnn_params(key, vocab_size, hidden_size, entity_size, n_type=2):
    H, E = hidden_size, entity_size
    KP = _round_up(H, LANE)
    NP = _round_up(E + 3, LANE)
    ks = jax.random.split(key, 7)
    s = 0.05
    embed = s * jax.random.normal(ks[0], (vocab_size, H), jnp.float32)
    type_embed = s * jax.random.normal(ks[1], (n_type, H), jnp.float32)
    enc_w = s * jax.random.normal(ks[2], (H, H), jnp.float32)
    enc_b = jnp.zeros((H,), jnp.float32)
    asp_w = s * jax.random.normal(ks[3], (H, E), jnp.float32)
    asp_b = s * jax.random.normal(ks[4], (E,), jnp.float32)
    opi_w = s * jax.random.normal(ks[5], (H, 3), jnp.float32)
    opi_b = s * jax.random.normal(ks[6], (3,), jnp.float32)

    enc_w_pad = jnp.zeros((KP, KP), jnp.bfloat16)
    enc_w_pad = enc_w_pad.at[:H, :H].set(enc_w.astype(jnp.bfloat16))
    enc_b_pad = jnp.zeros((1, KP), jnp.float32).at[0, :H].set(enc_b)

    head_w = jnp.zeros((KP, NP), jnp.bfloat16)
    head_w = head_w.at[:H, :E].set(asp_w.astype(jnp.bfloat16))
    head_w = head_w.at[:H, E:E + 3].set(opi_w.astype(jnp.bfloat16))
    head_b = jnp.zeros((1, NP), jnp.float32)
    head_b = head_b.at[0, :E].set(asp_b).at[0, E:E + 3].set(opi_b)

    return {"embed": embed, "type_embed": type_embed,
            "enc_w": enc_w_pad, "enc_b": enc_b_pad,
            "head_w": head_w, "head_b": head_b}


def generating_next_query(batch_dict, logits, prev_input_ids, args,
                          query_type="aspect", model_mode="test"):
    # TODO(synk): the real helper rebuilds the next natural-language query from
    # predicted spans (token-level, data-dependent string ops); here we
    # deterministically reuse the initial inputs so the role-flip loop runs.
    return (batch_dict["initial_input_ids"],
            batch_dict["initial_attention_mask"],
            batch_dict["initial_token_type_ids"],
            None)


# ----------------------------------------------------------------------------
# RoleFlippedModule
# ----------------------------------------------------------------------------
class RoleFlippedModulePallas:
    def __init__(self, args, key):
        self.args = args
        k1, k2 = jax.random.split(key)
        self.params1 = init_ffnn_params(k1, args.vocab_size, args.hidden_size,
                                        args.entity_size)
        self.params2 = init_ffnn_params(k2, args.vocab_size, args.hidden_size,
                                        args.entity_size)
        self.sep_id = 2
        self.cls_id = 0
        self._cache = {}
        self._cache_refs = []

    # ---- cached fused forward (one kernel launch per (model, query)) --------
    def _ffnn(self, model_idx, ids, mask, tt):
        key = (model_idx, id(ids), id(mask), id(tt))
        hit = self._cache.get(key)
        if hit is None:
            params = self.params1 if model_idx == 1 else self.params2
            hit = ffnn_forward_fused(params, ids, mask, tt,
                                     entity_size=self.args.entity_size)
            self._cache[key] = hit
            self._cache_refs.append((ids, mask, tt))   # keep ids alive for id()
        return hit

    # ---- processOutput (probs already computed on-device, lists are glue) ---
    def process_output(self, aspect_hidden, opinion_hidden, aspect_probs,
                       opinion_probs, queries_for_aspect, queries_for_opinion,
                       batch_dict, model_mode="test"):
        q_op = np.asarray(queries_for_opinion)
        op_prob_np = np.asarray(opinion_probs)      # (B, S, 3)
        asp_prob_np = np.asarray(aspect_probs)      # (B, E)
        B = op_prob_np.shape[0]

        aspect_hs_list, aspect_list = [], []
        opinion_hs_list, opinion_list = [], []
        for i in range(B):
            sep_pos = np.nonzero(q_op[i] == self.sep_id)[0]
            passage = np.arange(sep_pos[0] + 1, sep_pos[1])
            # opinion spans (simplified): passage tokens with argmax label 1
            # whose max prob clears opinion_threshold, capped at q.
            probs_i = op_prob_np[i][passage]
            labels = np.argmax(probs_i, axis=-1)
            max_vals = np.max(probs_i, axis=-1)
            opinions = []
            for j in np.nonzero(labels == 1)[0]:
                if max_vals[j] >= self.args.opinion_threshold:
                    opinions.append([int(j)])
                if len(opinions) >= self.args.q:
                    break
            opinion_list.append(opinions)
            # aspects: sigmoid-rounded labels == 1, capped at p
            asp_labels = np.round(asp_prob_np[i])
            aspects = [int(j) for j in np.nonzero(asp_labels == 1)[0][: self.args.p]]
            aspect_list.append(aspects)
            opinion_hs_list.append(opinion_hidden[i, passage, :])
            aspect_hs_list.append(aspect_hidden[i, 0, :])
        return aspect_hs_list, aspect_list, opinion_hs_list, opinion_list

    # ---- one role-flip branch (device side only) -----------------------------
    def _run_branch(self, model_idx, first_answer, batch_dict, model_mode):
        args = self.args
        init_ids = batch_dict["initial_input_ids"]
        init_mask = batch_dict["initial_attention_mask"]
        init_tt = batch_dict["initial_token_type_ids"]

        hid, asp_lg, opi_lg, asp_pr, opi_pr = self._ffnn(
            model_idx, init_ids, init_mask, init_tt)

        aspect_hidden = opinion_hidden = None
        aspect_probs = opinion_probs = None
        queries_for_aspect = init_ids
        queries_for_opinion = init_ids

        if first_answer == "aspect":
            aspect_hidden, aspect_probs = hid, asp_pr
            ids, mask, tt, _ = generating_next_query(
                batch_dict, asp_lg, init_ids, args, "aspect", model_mode)
            cur = "opinion"
        else:
            opinion_hidden, opinion_probs = hid, opi_pr
            ids, mask, tt, _ = generating_next_query(
                batch_dict, opi_lg, init_ids, args, "opinion", model_mode)
            cur = "aspect"

        for _ in range(args.T):
            hid, asp_lg, opi_lg, asp_pr, opi_pr = self._ffnn(model_idx, ids, mask, tt)
            if cur == "opinion":
                queries_for_opinion = ids
                opinion_hidden, opinion_probs = hid, opi_pr
                ids, mask, tt, _ = generating_next_query(
                    batch_dict, opi_lg, queries_for_opinion, args, "opinion",
                    model_mode)
                cur = "aspect"
            else:
                queries_for_aspect = ids
                aspect_hidden, aspect_probs = hid, asp_pr
                ids, mask, tt, _ = generating_next_query(
                    batch_dict, asp_lg, queries_for_aspect, args, "aspect",
                    model_mode)
                cur = "opinion"

        return dict(aspect_hidden=aspect_hidden, opinion_hidden=opinion_hidden,
                    aspect_probs=aspect_probs, opinion_probs=opinion_probs,
                    queries_for_aspect=queries_for_aspect,
                    queries_for_opinion=queries_for_opinion)

    # ---- forward (eval mode; losses need external helpers) -------------------
    def forward(self, batch_dict, model_mode="test"):
        self._cache.clear()
        self._cache_refs = []

        # Issue ALL device work for both branches first (async dispatch) ...
        a2o = self._run_branch(1, "aspect", batch_dict, model_mode)
        o2a = self._run_branch(2, "opinion", batch_dict, model_mode)

        # ... then do host-side list building (np.asarray pulls happen here).
        (A2O_asp_hs, A2O_aspects, A2O_opi_hs, A2O_opinions) = self.process_output(
            a2o["aspect_hidden"], a2o["opinion_hidden"], a2o["aspect_probs"],
            a2o["opinion_probs"], a2o["queries_for_aspect"],
            a2o["queries_for_opinion"], batch_dict, model_mode)
        (O2A_asp_hs, O2A_aspects, O2A_opi_hs, O2A_opinions) = self.process_output(
            o2a["aspect_hidden"], o2a["opinion_hidden"], o2a["aspect_probs"],
            o2a["opinion_probs"], o2a["queries_for_aspect"],
            o2a["queries_for_opinion"], batch_dict, model_mode)

        # TODO(synk): lossA / lossO need calculate_A_loss / calculate_O_loss
        # (external, undefined in the reference) — only eval path is produced.
        return {
            "A2O_aspect_hidden_states": A2O_asp_hs,
            "A2O_opinion_hidden_states": A2O_opi_hs,
            "A2O_aspects_list": A2O_aspects,
            "A2O_opinions_list": A2O_opinions,
            "O2A_aspect_hidden_states": O2A_asp_hs,
            "O2A_opinion_hidden_states": O2A_opi_hs,
            "O2A_aspects_list": O2A_aspects,
            "O2A_opinions_list": O2A_opinions,
            "lossA": 0,
            "lossO": 0,
            "ignore_indexes": batch_dict["ignore_indexes"],
        }


# ----------------------------------------------------------------------------
# Driver
# ----------------------------------------------------------------------------
if __name__ == "__main__":
    args = SimpleNamespace(
        hidden_size=32, entity_size=8, vocab_size=32,
        T=2, p=2, q=2, opinion_threshold=0.3,
        lambda_aspect=1.0, lambda_opinion=1.0,
        ifgpu=False, model_type="synthetic-debertav3-xxsmall",
    )
    key = jax.random.PRNGKey(0)
    k_model, k_data = jax.random.split(key)

    B, S = 2, 8
    # token layout: [CLS=0, q, q, SEP=2, passage..., SEP=2]
    input_ids = jnp.array(
        [[0, 5, 6, 2, 8, 9, 10, 2],
         [0, 7, 4, 2, 11, 12, 13, 2]], dtype=jnp.int32)
    attention_mask = jnp.ones((B, S), dtype=jnp.int32)
    token_type_ids = jnp.array(
        [[0, 0, 0, 0, 1, 1, 1, 1],
         [0, 0, 0, 0, 1, 1, 1, 1]], dtype=jnp.int32)
    ignore_indexes = np.zeros((B, S), dtype=np.int64)

    batch_dict = {
        "initial_input_ids": input_ids,
        "initial_attention_mask": attention_mask,
        "initial_token_type_ids": token_type_ids,
        "ignore_indexes": ignore_indexes,
    }

    module = RoleFlippedModulePallas(args, k_model)
    result = module.forward(batch_dict, model_mode="test")

    # Block on every device array in the result.
    for leaf in jax.tree_util.tree_leaves(result):
        if isinstance(leaf, jax.Array):
            jax.block_until_ready(leaf)

    print("KERNEL_OK")
</pallas_src>

<mosaic_0001>
module attributes {stable_mosaic.version = 11 : i64} {
  func.func @_ffnn_fused_kernel(%arg0: i32, %arg1: memref<16x128xbf16, #tpu.memory_space<vmem>>, %arg2: memref<128x128xbf16, #tpu.memory_space<vmem>>, %arg3: memref<1x128xf32, #tpu.memory_space<vmem>>, %arg4: memref<128x128xbf16, #tpu.memory_space<vmem>>, %arg5: memref<1x128xf32, #tpu.memory_space<vmem>>, %arg6: memref<16x128xf32, #tpu.memory_space<vmem>>, %arg7: memref<16x128xf32, #tpu.memory_space<vmem>>, %arg8: memref<16x128xf32, #tpu.memory_space<vmem>>) attributes {dimension_semantics = [#tpu.dimension_semantics<parallel>], iteration_bounds = array<i64: 1>, scalar_prefetch = 0 : i64, scratch_operands = 0 : i64, tpu.core_type = #tpu.core_type<tc>, window_params = [{transform_indices = @transform_0, window_bounds = array<i64: 16, 128>}, {pipeline_mode = #tpu.pipeline_mode<synchronous>, transform_indices = @transform_1, window_bounds = array<i64: 128, 128>}, {pipeline_mode = #tpu.pipeline_mode<synchronous>, transform_indices = @transform_2, window_bounds = array<i64: 1, 128>}, {pipeline_mode = #tpu.pipeline_mode<synchronous>, transform_indices = @transform_3, window_bounds = array<i64: 128, 128>}, {pipeline_mode = #tpu.pipeline_mode<synchronous>, transform_indices = @transform_4, window_bounds = array<i64: 1, 128>}, {transform_indices = @transform_5, window_bounds = array<i64: 16, 128>}, {transform_indices = @transform_6, window_bounds = array<i64: 16, 128>}, {transform_indices = @transform_7, window_bounds = array<i64: 16, 128>}]} {
    %c0 = arith.constant 0 : index
    %c0_0 = arith.constant 0 : index
    %0 = vector.load %arg1[%c0, %c0_0] : memref<16x128xbf16, #tpu.memory_space<vmem>>, vector<16x128xbf16>
    %c0_1 = arith.constant 0 : index
    %c0_2 = arith.constant 0 : index
    %1 = vector.load %arg2[%c0_1, %c0_2] : memref<128x128xbf16, #tpu.memory_space<vmem>>, vector<128x128xbf16>
    %cst = arith.constant dense<0.000000e+00> : vector<16x128xf32>
    %2 = tpu.matmul %0, %1, %cst {dimension_numbers = #tpu.dot_dimension_numbers<[1], [0], [0], [1], [0, 0, 1, 1], [], []>} : vector<16x128xbf16>, vector<128x128xbf16>, vector<16x128xf32> -> vector<16x128xf32>
    %c0_3 = arith.constant 0 : index
    %c0_4 = arith.constant 0 : index
    %3 = vector.load %arg3[%c0_3, %c0_4] : memref<1x128xf32, #tpu.memory_space<vmem>>, vector<1x128xf32>
    %4 = vector.broadcast %3 : vector<1x128xf32> to vector<16x128xf32>
    %5 = arith.addf %2, %4 : vector<16x128xf32>
    %6 = math.tanh %5 : vector<16x128xf32>
    %c0_5 = arith.constant 0 : index
    %c0_6 = arith.constant 0 : index
    %7 = vector.load %arg6[%c0_5, %c0_6] : memref<16x128xf32, #tpu.memory_space<vmem>>, vector<16x128xf32>
    tpu.vector_store %arg6[%c0_5, %c0_6], %6 {strides = array<i32>} : memref<16x128xf32, #tpu.memory_space<vmem>>, vector<16x128xf32>,
    %8 = arith.truncf %6 : vector<16x128xf32> to vector<16x128xbf16>
    %c0_7 = arith.constant 0 : index
    %c0_8 = arith.constant 0 : index
    %9 = vector.load %arg4[%c0_7, %c0_8] : memref<128x128xbf16, #tpu.memory_space<vmem>>, vector<128x128xbf16>
    %cst_9 = arith.constant dense<0.000000e+00> : vector<16x128xf32>
    %10 = tpu.matmul %8, %9, %cst_9 {dimension_numbers = #tpu.dot_dimension_numbers<[1], [0], [0], [1], [0, 0, 1, 1], [], []>} : vector<16x128xbf16>, vector<128x128xbf16>, vector<16x128xf32> -> vector<16x128xf32>
    %c0_10 = arith.constant 0 : index
    %c0_11 = arith.constant 0 : index
    %11 = vector.load %arg5[%c0_10, %c0_11] : memref<1x128xf32, #tpu.memory_space<vmem>>, vector<1x128xf32>
    %12 = vector.broadcast %11 : vector<1x128xf32> to vector<16x128xf32>
    %13 = arith.addf %10, %12 : vector<16x128xf32>
    %c0_12 = arith.constant 0 : index
    %c0_13 = arith.constant 0 : index
    %14 = vector.load %arg7[%c0_12, %c0_13] : memref<16x128xf32, #tpu.memory_space<vmem>>, vector<16x128xf32>
    tpu.vector_store %arg7[%c0_12, %c0_13], %13 {strides = array<i32>} : memref<16x128xf32, #tpu.memory_space<vmem>>, vector<16x128xf32>,
    %15 = tpu.iota {dimensions = array<i32: 1>} : vector<16x128xi32>
    %c8_i32 = arith.constant 8 : i32
    %16 = vector.broadcast %c8_i32 : i32 to vector<16x128xi32>
    %17 = arith.cmpi sge, %15, %16 : vector<16x128xi32>
    %c11_i32 = arith.constant 11 : i32
    %18 = vector.broadcast %c11_i32 : i32 to vector<16x128xi32>
    %19 = arith.cmpi slt, %15, %18 : vector<16x128xi32>
    %20 = arith.andi %17, %19 : vector<16x128xi1>
    %cst_14 = arith.constant -1.000000e+30 : f32
    %21 = vector.broadcast %cst_14 : f32 to vector<16x128xf32>
    %22 = arith.select %20, %13, %21 : vector<16x128xi1>, vector<16x128xf32>
    %cst_15 = arith.constant dense<0xFF800000> : vector<16xf32>
    %23 = vector.multi_reduction <maximumf>, %22, %cst_15 [1] : vector<16x128xf32> to vector<16xf32>
    %24 = vector.shape_cast %23 : vector<16xf32> to vector<16x1xf32>
    %25 = vector.broadcast %24 : vector<16x1xf32> to vector<16x128xf32>
    %26 = arith.subf %13, %25 : vector<16x128xf32>
    %27 = math.exp %26 : vector<16x128xf32>
    %cst_16 = arith.constant 0.000000e+00 : f32
    %28 = vector.broadcast %cst_16 : f32 to vector<16x128xf32>
    %29 = arith.select %20, %27, %28 : vector<16x128xi1>, vector<16x128xf32>
    %cst_17 = arith.constant dense<0.000000e+00> : vector<16xf32>
    %30 = vector.multi_reduction <add>, %29, %cst_17 [1] : vector<16x128xf32> to vector<16xf32>
    %31 = vector.shape_cast %30 : vector<16xf32> to vector<16x1xf32>
    %32 = tpu.reciprocal %31 {approx = true} : vector<16x1xf32> -> vector<16x1xf32>
    %33 = vector.broadcast %32 : vector<16x1xf32> to vector<16x128xf32>
    %34 = arith.mulf %29, %33 : vector<16x128xf32>
    %cst_18 = arith.constant 0.000000e+00 : f32
    %35 = vector.broadcast %cst_18 : f32 to vector<16x128xf32>
    %36 = arith.subf %35, %13 : vector<16x128xf32>
    %37 = math.exp %36 : vector<16x128xf32>
    %cst_19 = arith.constant 1.000000e+00 : f32
    %38 = vector.broadcast %cst_19 : f32 to vector<16x128xf32>
    %39 = arith.addf %38, %37 : vector<16x128xf32>
    %40 = tpu.reciprocal %39 {approx = true} : vector<16x128xf32> -> vector<16x128xf32>
    %41 = arith.select %20, %34, %40 : vector<16x128xi1>, vector<16x128xf32>
    %c0_20 = arith.constant 0 : index
    %c0_21 = arith.constant 0 : index
    %42 = vector.load %arg8[%c0_20, %c0_21] : memref<16x128xf32, #tpu.memory_space<vmem>>, vector<16x128xf32>
    tpu.vector_store %arg8[%c0_20, %c0_21], %41 {strides = array<i32>} : memref<16x128xf32, #tpu.memory_space<vmem>>, vector<16x128xf32>,
    return
  }
  func.func @transform_0(%arg0: i32) -> (i32, i32) {
    %c0_i32 = arith.constant 0 : i32
    %c0_i32_0 = arith.constant 0 : i32
    return %arg0, %c0_i32 : i32, i32
  }
  func.func @transform_1(%arg0: i32) -> (i32, i32) {
    %c0_i32 = arith.constant 0 : i32
    %c0_i32_0 = arith.constant 0 : i32
    %c0_i32_1 = arith.constant 0 : i32
    return %c0_i32, %c0_i32_0 : i32, i32
  }
  func.func @transform_2(%arg0: i32) -> (i32, i32) {
    %c0_i32 = arith.constant 0 : i32
    %c0_i32_0 = arith.constant 0 : i32
    %c0_i32_1 = arith.constant 0 : i32
    return %c0_i32, %c0_i32_0 : i32, i32
  }
  func.func @transform_3(%arg0: i32) -> (i32, i32) {
    %c0_i32 = arith.constant 0 : i32
    %c0_i32_0 = arith.constant 0 : i32
    %c0_i32_1 = arith.constant 0 : i32
    return %c0_i32, %c0_i32_0 : i32, i32
  }
  func.func @transform_4(%arg0: i32) -> (i32, i32) {
    %c0_i32 = arith.constant 0 : i32
    %c0_i32_0 = arith.constant 0 : i32
    %c0_i32_1 = arith.constant 0 : i32
    return %c0_i32, %c0_i32_0 : i32, i32
  }
  func.func @transform_5(%arg0: i32) -> (i32, i32) {
    %c0_i32 = arith.constant 0 : i32
    %c0_i32_0 = arith.constant 0 : i32
    return %arg0, %c0_i32 : i32, i32
  }
  func.func @transform_6(%arg0: i32) -> (i32, i32) {
    %c0_i32 = arith.constant 0 : i32
    %c0_i32_0 = arith.constant 0 : i32
    return %arg0, %c0_i32 : i32, i32
  }
  func.func @transform_7(%arg0: i32) -> (i32, i32) {
    %c0_i32 = arith.constant 0 : i32
    %c0_i32_0 = arith.constant 0 : i32
    return %arg0, %c0_i32 : i32, i32
  }
}

</mosaic_0001>

<bundles_post_ra>
// kernel: ffnn_forward_fused.1
= control target key start
LH: loop header
LB: loop body
LE: loop exit
PB: predicated region body
PF: predicated region fallthrough
CT: control target
= control target key end

     0   :  { %v432_v0 = vmov 0.0   ;;  %vm433_vm0 = vmmov 0   ;;  %v263_v28 = vlaneseq  ;;  %s565_s1 = inlined_call_operand.vmem [shape: bf16[128,128], index: 1, kind: input, shape index: {}]   ;;  %s566_s3 = inlined_call_operand.vmem [shape: bf16[128,128], index: 3, kind: input, shape index: {}]   ;;  %s567_s0 = inlined_call_operand.vmem [shape: bf16[16,128], index: 0, kind: input, shape index: {}]   ;;  %s568_s2 = inlined_call_operand.vmem [shape: f32[1,128], index: 2, kind: input, shape index: {}]   ;;  %s569_s5 = inlined_call_operand.vmem [shape: f32[16,128], index: 5, kind: output, shape index: {0}]   ;;  %s570_s4 = inlined_call_operand.vmem [shape: f32[1,128], index: 4, kind: input, shape index: {}]   ;;  %s571_s6 = inlined_call_operand.vmem [shape: f32[16,128], index: 6, kind: output, shape index: {1}]   ;;  %s572_s7 = inlined_call_operand.vmem [shape: f32[16,128], index: 7, kind: output, shape index: {2}]  }
   0x1   :  { %353 = vmatprep.subr.bf16.mxu0 %v432_v0  ;;  %v395_v1 = vld [vmem:[%s565_s1] sm:$0xff]   ;;  %369 = vmatprep.mubr.msk.bf16.mxu0 %vm433_vm0, %v432_v0  ;;  %v396_v2 = vld [vmem:[%s565_s1 + $0x8] sm:$0xff]   ;;  %v397_v3 = vld [vmem:[%s565_s1 + $0x10] sm:$0xff]  }
   0x2   :  { %373 = vmatprep.subr.bf16.mxu1 %v432_v0  ;;  %389 = vmatprep.mubr.msk.bf16.mxu1 %vm433_vm0, %v432_v0  ;;  %v404_v4 = vld [vmem:[%s566_s3] sm:$0xff]   ;;  %v398_v5 = vld [vmem:[%s565_s1 + $0x18] sm:$0xff]   ;;  %v405_v6 = vld [vmem:[%s566_s3 + $0x8] sm:$0xff]   ;;  %v264_v29 = vand.u32 127, %v263_v28 }
   0x3   :  { %354 = vmatpush3.bf16.msra.mxu0 %v395_v1  ;;  %374 = vmatpush3.bf16.msra.mxu1 %v404_v4  ;;  %v399_v7 = vld [vmem:[%s565_s1 + $0x20] sm:$0xff]   ;;  %v406_v8 = vld [vmem:[%s566_s3 + $0x10] sm:$0xff]   ;;  %v400_v9 = vld [vmem:[%s565_s1 + $0x28] sm:$0xff]  }
   0x4   :  { %355 = vmatprep.subr.bf16.mxu0 %v432_v0  ;;  %375 = vmatprep.subr.bf16.mxu1 %v432_v0  ;;  %v407_v10 = vld [vmem:[%s566_s3 + $0x18] sm:$0xff]   ;;  %v401_v11 = vld [vmem:[%s565_s1 + $0x30] sm:$0xff]   ;;  %v403_v13 = vld [vmem:[%s567_s0] sm:$0xff]   ;;  %vm265_vm1 = vcmp.ge.s32.totalorder %v264_v29, 8  ;;  %vm266_vm2 = vcmp.lt.s32.totalorder %v264_v29, 11 }
   0x5   :  { %v402_v12 = vld [vmem:[%s565_s1 + $0x38] sm:$0xff]   ;;  %v408_v14 = vld [vmem:[%s566_s3 + $0x20] sm:$0xff]   ;;  %v409_v15 = vld [vmem:[%s566_s3 + $0x28] sm:$0xff]  }
   0x6   :  { %v410_v16 = vld [vmem:[%s566_s3 + $0x30] sm:$0xff]   ;;  %v411_v17 = vld [vmem:[%s566_s3 + $0x38] sm:$0xff]   ;;  %v316_v18 = vld [vmem:[%s568_s2] ss:$0 sm:$0xff] }
   0x7   :  { %356 = vmatpush3.bf16.msra.mxu0 %v396_v2  ;;  %376 = vmatpush3.bf16.msra.mxu1 %v405_v6  ;;  %v326_v30 = vld [vmem:[%s570_s4] ss:$0 sm:$0xff]  ;;  %vm537_vm3 = vmand %vm265_vm1, %vm266_vm2 }
   0x8   :  { %357 = vmatprep.subr.bf16.mxu0 %v432_v0  ;;  %377 = vmatprep.subr.bf16.mxu1 %v432_v0 }
   0xb   :  { %358 = vmatpush3.bf16.msra.mxu0 %v397_v3  ;;  %378 = vmatpush3.bf16.msra.mxu1 %v406_v8 }
   0xc   :  { %359 = vmatprep.subr.bf16.mxu0 %v432_v0  ;;  %379 = vmatprep.subr.bf16.mxu1 %v432_v0 }
   0xf   :  { %360 = vmatpush3.bf16.msra.mxu0 %v398_v5  ;;  %380 = vmatpush3.bf16.msra.mxu1 %v407_v10 }
  0x10   :  { %361 = vmatprep.subr.bf16.mxu0 %v432_v0  ;;  %381 = vmatprep.subr.bf16.mxu1 %v432_v0 }
  0x13   :  { %362 = vmatpush3.bf16.msra.mxu0 %v399_v7  ;;  %382 = vmatpush3.bf16.msra.mxu1 %v408_v14 }
  0x14   :  { %363 = vmatprep.subr.bf16.mxu0 %v432_v0  ;;  %383 = vmatprep.subr.bf16.mxu1 %v432_v0 }
  0x17   :  { %364 = vmatpush3.bf16.msra.mxu0 %v400_v9  ;;  %384 = vmatpush3.bf16.msra.mxu1 %v409_v15 }
  0x18   :  { %365 = vmatprep.subr.bf16.mxu0 %v432_v0  ;;  %385 = vmatprep.subr.bf16.mxu1 %v432_v0 }
  0x1b   :  { %366 = vmatpush3.bf16.msra.mxu0 %v401_v11  ;;  %386 = vmatpush3.bf16.msra.mxu1 %v410_v16 }
  0x1c   :  { %367 = vmatprep.subr.bf16.mxu0 %v432_v0  ;;  %387 = vmatprep.subr.bf16.mxu1 %v432_v0 }
  0x1f   :  { %368 = vmatpush3.bf16.msra.mxu0 %v402_v12  ;;  %388 = vmatpush3.bf16.msra.mxu1 %v411_v17 }
  0x22   :  { %370 = vmatmul.mubr.bf16.vlgmr.msra.gmra.mrb[0].mxu0 %v403_v13 }
  0xf5   :  { %v137_v19 = vpop.f32.mrb[0].mxu0 }
  0xf6   :  { %v138_v20 = vadd.f32 %v316_v18, %v137_v19  ;;  %v371_v21 = vpop.f32.mrb[1].mxu0 }
  0xf7   :  { %v140_v22 = vpop.f32.mrb[2].mxu0 }
  0xf8   :  { %412 = vtanh.f32 %v138_v20  ;;  %v141_v23 = vadd.f32 %v316_v18, %v140_v22  ;;  %v372_v24 = vpop.f32.mrb[3].mxu0 }
  0xfa   :  { %414 = vtanh.f32 %v141_v23 }
 0x102   :  { %v413_v25 = vpop.eup %412 }
 0x103   :  { %146 = vst [vmem:[%s569_s5] sm:$0xff] %v413_v25 }
 0x104   :  { %v415_v26 = vpop.eup %414 }
 0x105   :  { %147 = vst [vmem:[%s569_s5 + $0x8] sm:$0xff] %v415_v26  ;;  %v148_v27 = vpack.c.bf16 %v415_v26, %v413_v25 }
 0x107   :  { %390 = vmatmul.mubr.bf16.vlgmr.msra.gmra.mrb[0].mxu1 %v148_v27 }
 0x1da   :  { %v254_v31 = vpop.f32.mrb[0].mxu1 }
 0x1db   :  { %v255_v33 = vadd.f32 %v326_v30, %v254_v31  ;;  %v391_v34 = vpop.f32.mrb[1].mxu1 }
 0x1dc   :  { %v257_v35 = vpop.f32.mrb[2].mxu1 }
 0x1dd   :  { %261 = vst [vmem:[%s571_s6] sm:$0xff] %v255_v33  ;;  %v258_v36 = vadd.f32 %v326_v30, %v257_v35  ;;  %v392_v37 = vpop.f32.mrb[3].mxu1  ;;  %v268_v38 = vsel %vm537_vm3, %v255_v33, -1e+30  ;;  %v290_v50 = vsub.f32 0.0, %v255_v33 }
 0x1de   :  { %270 = vmax.xlane.f32.xlu0 %v268_v38 }
 0x1df   :  { %262 = vst [vmem:[%s571_s6 + $0x8] sm:$0xff] %v258_v36  ;;  %v269_v39 = vsel %vm537_vm3, %v258_v36, -1e+30  ;;  %v292_v51 = vmul.f32 1.442695, %v290_v50  ;;  %v291_v52 = vsub.f32 0.0, %v258_v36 }
 0x1e1   :  { %v294_v53 = vmul.f32 1.442695, %v291_v52 }
 0x1e2   :  { %272 = vmax.xlane.f32.xlu0 %v269_v39 }
 0x26b   :  { %v271_v40 = vpop.xlane.xlu0 %270 }
 0x26c   :  { %v274_v41 = vsub.f32 %v255_v33, %v271_v40 }
 0x26e   :  { %v276_v42 = vmul.f32 1.442695, %v274_v41 }
 0x26f   :  { %v273_v43 = vpop.xlane.xlu0 %272 }
 0x270   :  { %416 = vpow2.f32 %v276_v42  ;;  %v275_v44 = vsub.f32 %v258_v36, %v273_v43 }
 0x272   :  { %v278_v45 = vmul.f32 1.442695, %v275_v44 }
 0x274   :  { %418 = vpow2.f32 %v278_v45 }
 0x275   :  { %420 = vpow2.f32 %v292_v51 }
 0x276   :  { %422 = vpow2.f32 %v294_v53 }
 0x27a   :  { %v417_v46 = vpop.eup %416 }
 0x27b   :  { %v280_v47 = vsel %vm537_vm3, %v417_v46, 0.0 }
 0x27c   :  { %282 = vadd.xlane.f32.xlu1 %v280_v47 }
 0x27e   :  { %v419_v48 = vpop.eup %418 }
 0x27f   :  { %v281_v49 = vsel %vm537_vm3, %v419_v48, 0.0  ;;  %v421_v54 = vpop.eup %420 }
 0x280   :  { %284 = vadd.xlane.f32.xlu1 %v281_v49  ;;  %v296_v55 = vadd.f32 1.0, %v421_v54  ;;  %v423_v56 = vpop.eup %422 }
 0x281   :  { %v297_v58 = vadd.f32 1.0, %v423_v56 }
 0x309   :  { %v283_v57 = vpop.xlane.xlu1 %282 }
 0x30a   :  { %424 = vrcp.f32 %v283_v57 }
 0x30b   :  { %426 = vrcp.f32 %v296_v55 }
 0x30d   :  { %v285_v59 = vpop.xlane.xlu1 %284 }
 0x30e   :  { %428 = vrcp.f32 %v285_v59 }
 0x30f   :  { %430 = vrcp.f32 %v297_v58 }
 0x314   :  { %v425_v60 = vpop.eup %424 }
 0x315   :  { %v288_v61 = vmul.f32 %v425_v60, %v280_v47  ;;  %v427_v62 = vpop.eup %426 }
 0x317   :  { %v300_v63 = vsel %vm537_vm3, %v288_v61, %v427_v62 }
 0x318   :  { %v429_v0 = vpop.eup %428  ;;  %302 = vst [vmem:[%s572_s7] sm:$0xff] %v300_v63 }
 0x319   :  { %v289_v1 = vmul.f32 %v429_v0, %v281_v49  ;;  %v431_v2 = vpop.eup %430 }
 0x31b   :  { %v301_v3 = vsel %vm537_vm3, %v289_v1, %v431_v2 }
 0x31c   :  { %303 = vst [vmem:[%s572_s7 + $0x8] sm:$0xff] %v301_v3 }

</bundles_post_ra>
